<compile_context>
chip_gen: v5e
topology: v5e:2x2
jax: 0.10.0
libtpu: 0.0.40
codegen_flags: <defaults>
</compile_context>

<pallas_src>
import math
import jax
import jax.numpy as jnp
from jax.experimental import pallas as pl
from jax.experimental.pallas import tpu as pltpu

# ----------------------------- config ---------------------------------------
INPUT_DIM = 6
EMBED_DIMS = (32, 64, 32)        # embed_dims list; embed_dim = 32
ADD_DIM = 0
TILE_M_MAX = 4096                # rows per grid step (multiple of 8; well under
                                 # scoped-VMEM defaults on v5e/v6e/v7x)
# hidden_activation = ReLU (between layers only), output_activation = None,
# dropout = 0.0 -> identity.


def _round_up(x, m):
    return ((x + m - 1) // m) * m


# ----------------------------- kernel ---------------------------------------
def _fused_mlp_kernel(x_ref, *refs):
    """Fused MLP forward for one (TILE_M, input_dim) row-block.

    refs = (w0, b0, w1, b1, ..., wL-1, bL-1, out_ref)
    Weights are bf16 (MXU-native) and resident in VMEM (constant block index);
    biases are f32. Accumulation / elementwise work is f32.
    """
    out_ref = refs[-1]
    wb = refs[:-1]
    n_layers = len(wb) // 2

    h = x_ref[...].astype(jnp.float32)
    for i in range(n_layers):
        w = wb[2 * i][...]                       # bf16 (in_i, out_i)
        b = wb[2 * i + 1][...]                   # f32  (1, out_i) -> row broadcast
        h = jnp.dot(h.astype(jnp.bfloat16), w,
                    preferred_element_type=jnp.float32) + b
        if i < n_layers - 1:
            h = jnp.maximum(h, 0.0)              # hidden_activation = ReLU
    # output_activation is None -> no final nonlinearity
    out_ref[...] = h.astype(out_ref.dtype)


# ----------------------------- wrapper ---------------------------------------
def embedding_forward(x, params, *, tile_m=TILE_M_MAX):
    """x: (batch, seq, input_dim) float32. params: list of (W (in,out), b (1,out))."""
    batch, seq, f_in = x.shape
    assert f_in == INPUT_DIM + ADD_DIM
    m = batch * seq
    out_dim = EMBED_DIMS[-1]

    x2d = x.reshape(m, f_in)

    # Per-step tile: multiple of 8 sublanes, no bigger than (padded) M.
    tm = min(tile_m, _round_up(m, 8))
    m_pad = _round_up(m, tm)
    if m_pad != m:
        x2d = jnp.pad(x2d, ((0, m_pad - m), (0, 0)))
    grid = (m_pad // tm,)

    # Weights cast to bf16 once in the wrapper (MXU-native); biases stay f32.
    flat = []
    flat_specs = []
    for w, b in params:
        w16 = w.astype(jnp.bfloat16)
        flat.extend([w16, b])
        flat_specs.extend([
            # Constant block index -> DMA'd once, resident across all grid steps.
            pl.BlockSpec(w16.shape, lambda i: (0, 0)),
            pl.BlockSpec(b.shape, lambda i: (0, 0)),
        ])

    # Advisory cost estimate for the XLA scheduler.
    dims = [f_in] + list(EMBED_DIMS)
    per_row_flops = 2 * sum(dims[i] * dims[i + 1] for i in range(len(EMBED_DIMS)))
    param_bytes = sum(int(a.size) * a.dtype.itemsize for a in flat)
    cost = pl.CostEstimate(
        flops=int(m_pad * per_row_flops),
        transcendentals=0,
        bytes_accessed=int(m_pad * (f_in + out_dim) * 4 + param_bytes),
    )

    y2d = pl.pallas_call(
        _fused_mlp_kernel,
        out_shape=jax.ShapeDtypeStruct((m_pad, out_dim), x.dtype),
        grid=grid,
        in_specs=[pl.BlockSpec((tm, f_in), lambda i: (i, 0))] + flat_specs,
        out_specs=pl.BlockSpec((tm, out_dim), lambda i: (i, 0)),
        compiler_params=pltpu.CompilerParams(
            dimension_semantics=("parallel",),   # megacore sharding on v7x
        ),
        cost_estimate=cost,
    )(x2d, *flat)

    return y2d[:m].reshape(batch, seq, out_dim)


# ----------------------------- param init ------------------------------------
def init_params(key):
    """Deterministic init mimicking nn.Linear default (uniform +-1/sqrt(fan_in))."""
    params = []
    dims = [INPUT_DIM + ADD_DIM] + list(EMBED_DIMS)
    for i in range(len(EMBED_DIMS)):
        key, kw, kb = jax.random.split(key, 3)
        fan_in, fan_out = dims[i], dims[i + 1]
        bound = 1.0 / math.sqrt(fan_in)
        w = jax.random.uniform(kw, (fan_in, fan_out), jnp.float32, -bound, bound)
        b = jax.random.uniform(kb, (1, fan_out), jnp.float32, -bound, bound)
        params.append((w, b))
    return params


# ----------------------------- reference -------------------------------------
def embedding_reference(x, params, *, bf16_matmul=False):
    batch, seq, f_in = x.shape
    h = x.reshape(batch * seq, f_in)
    n = len(params)
    for i, (w, b) in enumerate(params):
        if bf16_matmul:
            h = jnp.dot(h.astype(jnp.bfloat16), w.astype(jnp.bfloat16),
                        preferred_element_type=jnp.float32) + b
        else:
            h = h @ w + b
        if i < n - 1:
            h = jnp.maximum(h, 0.0)
    return h.reshape(batch, seq, EMBED_DIMS[-1])


# ----------------------------- main -------------------------------------------
if __name__ == "__main__":
    key = jax.random.PRNGKey(0)
    key, kx = jax.random.split(key)

    batch, seq = 2, 8
    x = jax.random.normal(kx, (batch, seq, INPUT_DIM), jnp.float32)

    params = init_params(key)

    y = embedding_forward(x, params)
    y = jax.block_until_ready(y)
    assert y.shape == (batch, seq, EMBED_DIMS[-1]), y.shape

    # Tight check vs a reference that mirrors the bf16-MXU / f32-accumulate path.
    y_ref_bf16 = embedding_reference(x, params, bf16_matmul=True)
    assert jnp.allclose(y, y_ref_bf16, atol=2e-3, rtol=2e-3), "mismatch vs bf16 reference"

    # Relaxed check vs the exact f32 PyTorch-equivalent math (bf16 rounding slack).
    y_ref_f32 = embedding_reference(x, params, bf16_matmul=False)
    assert jnp.allclose(y, y_ref_f32, atol=3e-2, rtol=3e-2), "mismatch vs f32 reference"

    print("KERNEL_OK")
</pallas_src>

<mosaic_0001>
module attributes {stable_mosaic.version = 11 : i64} {
  func.func @_fused_mlp_kernel(%arg0: i32, %arg1: memref<16x6xf32, #tpu.memory_space<vmem>>, %arg2: memref<6x32xbf16, #tpu.memory_space<vmem>>, %arg3: memref<1x32xf32, #tpu.memory_space<vmem>>, %arg4: memref<32x64xbf16, #tpu.memory_space<vmem>>, %arg5: memref<1x64xf32, #tpu.memory_space<vmem>>, %arg6: memref<64x32xbf16, #tpu.memory_space<vmem>>, %arg7: memref<1x32xf32, #tpu.memory_space<vmem>>, %arg8: memref<16x32xf32, #tpu.memory_space<vmem>>) attributes {dimension_semantics = [#tpu.dimension_semantics<parallel>], iteration_bounds = array<i64: 1>, scalar_prefetch = 0 : i64, scratch_operands = 0 : i64, tpu.core_type = #tpu.core_type<tc>, window_params = [{transform_indices = @transform_0, window_bounds = array<i64: 16, 6>}, {pipeline_mode = #tpu.pipeline_mode<synchronous>, transform_indices = @transform_1, window_bounds = array<i64: 6, 32>}, {pipeline_mode = #tpu.pipeline_mode<synchronous>, transform_indices = @transform_2, window_bounds = array<i64: 1, 32>}, {pipeline_mode = #tpu.pipeline_mode<synchronous>, transform_indices = @transform_3, window_bounds = array<i64: 32, 64>}, {pipeline_mode = #tpu.pipeline_mode<synchronous>, transform_indices = @transform_4, window_bounds = array<i64: 1, 64>}, {pipeline_mode = #tpu.pipeline_mode<synchronous>, transform_indices = @transform_5, window_bounds = array<i64: 64, 32>}, {pipeline_mode = #tpu.pipeline_mode<synchronous>, transform_indices = @transform_6, window_bounds = array<i64: 1, 32>}, {transform_indices = @transform_7, window_bounds = array<i64: 16, 32>}]} {
    %c0 = arith.constant 0 : index
    %c0_0 = arith.constant 0 : index
    %0 = vector.load %arg1[%c0, %c0_0] : memref<16x6xf32, #tpu.memory_space<vmem>>, vector<16x6xf32>
    %c0_1 = arith.constant 0 : index
    %c0_2 = arith.constant 0 : index
    %1 = vector.load %arg2[%c0_1, %c0_2] : memref<6x32xbf16, #tpu.memory_space<vmem>>, vector<6x32xbf16>
    %c0_3 = arith.constant 0 : index
    %c0_4 = arith.constant 0 : index
    %2 = vector.load %arg3[%c0_3, %c0_4] : memref<1x32xf32, #tpu.memory_space<vmem>>, vector<1x32xf32>
    %3 = arith.truncf %0 : vector<16x6xf32> to vector<16x6xbf16>
    %cst = arith.constant dense<0.000000e+00> : vector<16x32xf32>
    %4 = tpu.matmul %3, %1, %cst {dimension_numbers = #tpu.dot_dimension_numbers<[1], [0], [0], [1], [0, 0, 1, 1], [], []>} : vector<16x6xbf16>, vector<6x32xbf16>, vector<16x32xf32> -> vector<16x32xf32>
    %5 = vector.broadcast %2 : vector<1x32xf32> to vector<16x32xf32>
    %6 = arith.addf %4, %5 : vector<16x32xf32>
    %cst_5 = arith.constant 0.000000e+00 : f32
    %7 = vector.broadcast %cst_5 : f32 to vector<16x32xf32>
    %8 = arith.maximumf %6, %7 : vector<16x32xf32>
    %c0_6 = arith.constant 0 : index
    %c0_7 = arith.constant 0 : index
    %9 = vector.load %arg4[%c0_6, %c0_7] : memref<32x64xbf16, #tpu.memory_space<vmem>>, vector<32x64xbf16>
    %c0_8 = arith.constant 0 : index
    %c0_9 = arith.constant 0 : index
    %10 = vector.load %arg5[%c0_8, %c0_9] : memref<1x64xf32, #tpu.memory_space<vmem>>, vector<1x64xf32>
    %11 = arith.truncf %8 : vector<16x32xf32> to vector<16x32xbf16>
    %cst_10 = arith.constant dense<0.000000e+00> : vector<16x64xf32>
    %12 = tpu.matmul %11, %9, %cst_10 {dimension_numbers = #tpu.dot_dimension_numbers<[1], [0], [0], [1], [0, 0, 1, 1], [], []>} : vector<16x32xbf16>, vector<32x64xbf16>, vector<16x64xf32> -> vector<16x64xf32>
    %13 = vector.broadcast %10 : vector<1x64xf32> to vector<16x64xf32>
    %14 = arith.addf %12, %13 : vector<16x64xf32>
    %cst_11 = arith.constant 0.000000e+00 : f32
    %15 = vector.broadcast %cst_11 : f32 to vector<16x64xf32>
    %16 = arith.maximumf %14, %15 : vector<16x64xf32>
    %c0_12 = arith.constant 0 : index
    %c0_13 = arith.constant 0 : index
    %17 = vector.load %arg6[%c0_12, %c0_13] : memref<64x32xbf16, #tpu.memory_space<vmem>>, vector<64x32xbf16>
    %c0_14 = arith.constant 0 : index
    %c0_15 = arith.constant 0 : index
    %18 = vector.load %arg7[%c0_14, %c0_15] : memref<1x32xf32, #tpu.memory_space<vmem>>, vector<1x32xf32>
    %19 = arith.truncf %16 : vector<16x64xf32> to vector<16x64xbf16>
    %cst_16 = arith.constant dense<0.000000e+00> : vector<16x32xf32>
    %20 = tpu.matmul %19, %17, %cst_16 {dimension_numbers = #tpu.dot_dimension_numbers<[1], [0], [0], [1], [0, 0, 1, 1], [], []>} : vector<16x64xbf16>, vector<64x32xbf16>, vector<16x32xf32> -> vector<16x32xf32>
    %21 = vector.broadcast %18 : vector<1x32xf32> to vector<16x32xf32>
    %22 = arith.addf %20, %21 : vector<16x32xf32>
    %c0_17 = arith.constant 0 : index
    %c0_18 = arith.constant 0 : index
    %23 = vector.load %arg8[%c0_17, %c0_18] : memref<16x32xf32, #tpu.memory_space<vmem>>, vector<16x32xf32>
    tpu.vector_store %arg8[%c0_17, %c0_18], %22 {strides = array<i32>} : memref<16x32xf32, #tpu.memory_space<vmem>>, vector<16x32xf32>,
    return
  }
  func.func @transform_0(%arg0: i32) -> (i32, i32) {
    %c0_i32 = arith.constant 0 : i32
    %c0_i32_0 = arith.constant 0 : i32
    return %arg0, %c0_i32 : i32, i32
  }
  func.func @transform_1(%arg0: i32) -> (i32, i32) {
    %c0_i32 = arith.constant 0 : i32
    %c0_i32_0 = arith.constant 0 : i32
    %c0_i32_1 = arith.constant 0 : i32
    return %c0_i32, %c0_i32_0 : i32, i32
  }
  func.func @transform_2(%arg0: i32) -> (i32, i32) {
    %c0_i32 = arith.constant 0 : i32
    %c0_i32_0 = arith.constant 0 : i32
    %c0_i32_1 = arith.constant 0 : i32
    return %c0_i32, %c0_i32_0 : i32, i32
  }
  func.func @transform_3(%arg0: i32) -> (i32, i32) {
    %c0_i32 = arith.constant 0 : i32
    %c0_i32_0 = arith.constant 0 : i32
    %c0_i32_1 = arith.constant 0 : i32
    return %c0_i32, %c0_i32_0 : i32, i32
  }
  func.func @transform_4(%arg0: i32) -> (i32, i32) {
    %c0_i32 = arith.constant 0 : i32
    %c0_i32_0 = arith.constant 0 : i32
    %c0_i32_1 = arith.constant 0 : i32
    return %c0_i32, %c0_i32_0 : i32, i32
  }
  func.func @transform_5(%arg0: i32) -> (i32, i32) {
    %c0_i32 = arith.constant 0 : i32
    %c0_i32_0 = arith.constant 0 : i32
    %c0_i32_1 = arith.constant 0 : i32
    return %c0_i32, %c0_i32_0 : i32, i32
  }
  func.func @transform_6(%arg0: i32) -> (i32, i32) {
    %c0_i32 = arith.constant 0 : i32
    %c0_i32_0 = arith.constant 0 : i32
    %c0_i32_1 = arith.constant 0 : i32
    return %c0_i32, %c0_i32_0 : i32, i32
  }
  func.func @transform_7(%arg0: i32) -> (i32, i32) {
    %c0_i32 = arith.constant 0 : i32
    %c0_i32_0 = arith.constant 0 : i32
    return %arg0, %c0_i32 : i32, i32
  }
}

</mosaic_0001>

<bundles_post_ra>
// kernel: tpu_custom_call.1
= control target key start
LH: loop header
LB: loop body
LE: loop exit
PB: predicated region body
PF: predicated region fallthrough
CT: control target
= control target key end

     0   :  { %vm40_vm0 = vcmask 1042432   ;;  %vm36_vm1 = vcmask 48128   ;;  %s326_s0 = inlined_call_operand.vmem [shape: f32[16,6], index: 0, kind: input, shape index: {}]   ;;  %s327_s1 = inlined_call_operand.vmem [shape: bf16[6,32], index: 1, kind: input, shape index: {}]   ;;  %s328_s2 = inlined_call_operand.vmem [shape: f32[1,32], index: 2, kind: input, shape index: {}]   ;;  %s329_s3 = inlined_call_operand.vmem [shape: bf16[32,64], index: 3, kind: input, shape index: {}]   ;;  %s330_s4 = inlined_call_operand.vmem [shape: f32[1,64], index: 4, kind: input, shape index: {}]   ;;  %s331_s5 = inlined_call_operand.vmem [shape: bf16[64,32], index: 5, kind: input, shape index: {}]   ;;  %s332_s6 = inlined_call_operand.vmem [shape: f32[1,32], index: 6, kind: input, shape index: {}]   ;;  %s333_s7 = inlined_call_operand.hbm [shape: f32[16,32], index: 7, kind: output, shape index: {}]  }
   0x1   :  { %v30_v0 = vld [vmem:[%s327_s1] sm:$0x7]  ;;  %v29_v2 = vld [vmem:[%s326_s0 + $0x8] sm:$0xff] }
   0x2   :  { %v28_v1 = vld [vmem:[%s326_s0] sm:$0xff]  ;;  %v42_v3 = vsel %vm40_vm0, %v30_v0, 0 }
   0x3   :  { %v32_v4 = vpack.c.bf16 %v29_v2, %v28_v1  ;;  %51 = vmatpush.bf16.msra.mxu0 %v42_v3 }
   0x4   :  { %12 = vsyncpa [#allocation3], 0  ;;  %v204_v5 = vld [vmem:[%s329_s3 + $0x8] sm:$0xff]  ;;  %v203_v6 = vld [vmem:[%s329_s3] sm:$0xff]  ;;  %vm81_vm2 = vcmask 261120   ;;  %vm138_vm3 = vcmask 523264  }
   0x5   :  { %91 = vmatpush.bf16.msra.mxu1 %v204_v5  ;;  %v212_v8 = vld [vmem:[%s328_s2] ss:$0 sm:$0xff]  ;;  %v208_v15 = vld [vmem:[%s331_s5 + $0x18] sm:$0xff]  ;;  %v207_v16 = vld [vmem:[%s331_s5 + $0x10] sm:$0xff]  ;;  %s164_s23 = sshll.u32 %s333_s7, 4  ;;  %s242_s24 = smov 128   ;;  %s165_s23 = int_to_ptr.hbm [resolvable:$true] %s164_s23 }
   0x6   :  { %176 = vmatmul.msk.bf16.vlgmr.msra.gmra.mxu0 %vm36_vm1, %v32_v4  ;;  %146 = vmatpush.bf16.msra.mxu2 %v208_v15  ;;  %v206_v17 = vld [vmem:[%s331_s5 + $0x8] sm:$0xff]  ;;  %v205_v18 = vld [vmem:[%s331_s5] sm:$0xff]  ;;  %s241_s5 = smov [#allocation2]   ;;  %s243_s25 = smov 8  }
   0x7   :  { %v213_v20 = vld [vmem:[%s330_s4] ss:$0 sm:$0xff]  ;;  %s162_s21 = sshll.u32 %s241_s5, 4  ;;  %s163_s21 = int_to_ptr.vmem [resolvable:$true] %s162_s21 }
   0x8   :  { %v214_v27 = vld [vmem:[%s332_s6] ss:$0 sm:$0xff] }
   0x9   :  { %92 = vmatpush.bf16.msra.mxu1 %v203_v6 }
   0xa   :  { %147 = vmatpush.bf16.msra.mxu2 %v207_v16 }
   0xe   :  { %148 = vmatpush.bf16.msra.mxu2 %v206_v17 }
  0x12   :  { %149 = vmatpush.bf16.msra.mxu2 %v205_v18 }
  0x83   :  { %v53_v7 = vpop.f32.mrf.mxu0 }
  0x84   :  { %v54_v9 = vadd.f32 %v212_v8, %v53_v7 }
  0x86   :  { %v58_v12 = vmax.f32 %v54_v9, 0.0 }
  0x8b   :  { %v55_v10 = vpop.f32.mrf.mxu0 }
  0x8c   :  { %v56_v11 = vadd.f32 %v212_v8, %v55_v10 }
  0x8e   :  { %v59_v13 = vmax.f32 %v56_v11, 0.0 }
  0x90   :  { %v65_v14 = vpack.c.bf16 %v59_v13, %v58_v12 }
  0x92   :  { %185 = vmatmul.msk.bf16.vlgmr.msra.gmra.mxu1 %vm81_vm2, %v65_v14 }
 0x10f   :  { %v94_v19 = vpop.f32.mrf.mxu1 }
 0x110   :  { %v95_v21 = vadd.f32 %v213_v20, %v94_v19 }
 0x112   :  { %v99_v24 = vmax.f32 %v95_v21, 0.0 }
 0x117   :  { %v96_v22 = vpop.f32.mrf.mxu1 }
 0x118   :  { %v97_v23 = vadd.f32 %v213_v20, %v96_v22 }
 0x11a   :  { %v100_v25 = vmax.f32 %v97_v23, 0.0 }
 0x11c   :  { %v110_v26 = vpack.c.bf16 %v100_v25, %v99_v24 }
 0x11e   :  { %202 = vmatmul.msk.bf16.vlgmr.msra.gmra.mxu2 %vm138_vm3, %v110_v26 }
 0x1a1   :  { %v151_v28 = vpop.f32.mrf.mxu2 }
 0x1a2   :  { %v152_v29 = vadd.f32 %v214_v27, %v151_v28 }
 0x1a4   :  { %156 = vst.msk [vmem:[#allocation2] sm:$0xff] %vm81_vm2, %v152_v29 }
 0x1a9   :  { %v153_v30 = vpop.f32.mrf.mxu2 }
 0x1aa   :  { %v154_v31 = vadd.f32 %v214_v27, %v153_v30 }
 0x1ac   :  { %157 = vst.msk [vmem:[#allocation2 + $0x8] sm:$0xff] %vm81_vm2, %v154_v31 }
 0x1ad   :  { %170 = dma.vmem_to_hbm [thread:$0]  %s163_s21, 256, %s165_s23, [#allocation3], %s242_s24, %s242_s24, %s243_s25  }
 0x1ae   :  { %239 = dma.done.wait [#allocation3], 256  }
 0x1af   :  { %240 = vsyncadd [#allocation3], 4294967040 }
 0x1b0   :  { %175 = vsyncpa [#allocation3], 1 }

</bundles_post_ra>
